<compile_context>
chip_gen: v7x
topology: tpu7x:2x2x1
jax: 0.10.0
libtpu: 0.0.40
codegen_flags: <defaults>
</compile_context>

<pallas_src>
import functools

import jax
import jax.numpy as jnp
from jax import lax
from jax.experimental import pallas as pl
from jax.experimental.pallas import tpu as pltpu

LANES = 128


def _round_down(x, m):
    return (x // m) * m


def _detect_tpu():
    """Returns (cores for the leading 'parallel' axis, target bytes per input block)."""
    try:
        kind = jax.devices()[0].device_kind.lower()
    except Exception:
        kind = ""
    if "v7" in kind:      # 2 TCs/chip, ~3.2 TB/s HBM -> big blocks, split across TCs
        return 2, 4 << 20
    if "v6" in kind:      # 1 TC, 32 MiB default scoped VMEM -> 2 MiB blocks
        return 1, 2 << 20
    return 1, 1 << 20     # v5e / unknown: 1 TC, 16 MiB scoped VMEM -> 1 MiB blocks


_N_CORES_HW, _BLOCK_BYTES = _detect_tpu()


def _make_kernel(block_rows, steps_per_core, valid_rows, needs_mask):
    def kernel(p_ref, t_ref, o_ref):
        c = pl.program_id(0)
        s = pl.program_id(1)

        @pl.when(s == 0)
        def _():
            o_ref[...] = jnp.zeros_like(o_ref)

        d = p_ref[...].astype(jnp.float32) - t_ref[...].astype(jnp.float32)
        if needs_mask:
            # Mask rows past the end of the real slab (ragged last block and any
            # clamped extra block).  Pure VPU work, hidden under the input DMA.
            start_row = (c * steps_per_core + s) * block_rows
            row_ids = start_row + lax.broadcasted_iota(
                jnp.int32, (block_rows, LANES), 0)
            d = jnp.where(row_ids < valid_rows, d, 0.0)
        sq = d * d
        # Fold the (block_rows,128) tile into the resident one-vreg (8,128) output:
        # pure elementwise adds; cross-lane reduce + sqrt happen once, outside.
        o_ref[...] += jnp.sum(sq.reshape(-1, 8, LANES), axis=0)

    return kernel


@functools.partial(jax.jit, static_argnames=("block_rows_max",))
def frobenius_norm_loss(pred, target, *, block_rows_max=None):
    assert pred.shape == target.shape, "Prediction and target must have the same shape"

    n = pred.size
    rows, tail = divmod(n, LANES)

    itemsize = max(jnp.dtype(pred.dtype).itemsize, jnp.dtype(target.dtype).itemsize)
    row_align = max(8, 32 // itemsize)   # sublane packing: f32->8, bf16->16, int8->32

    p_flat = pred.reshape(-1)
    t_flat = target.reshape(-1)

    # Ragged tail (< 128 elements): trivial jnp sum, added to the kernel partials.
    tail_sq = jnp.float32(0.0)
    if tail:
        dt = (p_flat[rows * LANES:].astype(jnp.float32)
              - t_flat[rows * LANES:].astype(jnp.float32))
        tail_sq = jnp.sum(dt * dt)

    # Tiny inputs: not worth a kernel launch (and keeps block <= array in-kernel).
    if rows < row_align:
        if rows:
            dh = (p_flat[: rows * LANES].astype(jnp.float32)
                  - t_flat[: rows * LANES].astype(jnp.float32))
            tail_sq = tail_sq + jnp.sum(dh * dh)
        return jnp.sqrt(tail_sq).astype(pred.dtype)

    # Lane-dense (rows, 128) slab.  n % 128 == 0 -> pure bitcast, no copy.
    # Otherwise only a prefix slice of the flat array (never a full jnp.pad copy).
    def slab(x):
        return (x if not tail else x[: rows * LANES]).reshape(rows, LANES)

    p2, t2 = slab(p_flat), slab(t_flat)

    n_cores = _N_CORES_HW if rows >= _N_CORES_HW * row_align else 1
    max_rows = max(row_align, _round_down(_BLOCK_BYTES // (LANES * itemsize), row_align))
    rows_per_core = -(-rows // n_cores)
    block_rows = min(max_rows, max(row_align, _round_down(rows_per_core, row_align)))
    if block_rows_max is not None:
        block_rows = min(block_rows, max(8, _round_down(block_rows_max, 8)))
    steps_per_core = -(-rows // (n_cores * block_rows))
    num_blocks = -(-rows // block_rows)
    needs_mask = n_cores * steps_per_core * block_rows != rows

    if n_cores * steps_per_core > num_blocks:
        # A (core, step) pair may land past the last real block; clamp its DMA to
        # the last valid block -- its contribution is fully masked off in-kernel.
        in_map = lambda c, s: (jnp.minimum(c * steps_per_core + s, num_blocks - 1), 0)
    else:
        in_map = lambda c, s: (c * steps_per_core + s, 0)

    partials = pl.pallas_call(
        _make_kernel(block_rows, steps_per_core, rows, needs_mask),
        out_shape=jax.ShapeDtypeStruct((n_cores * 8, LANES), jnp.float32),
        grid_spec=pltpu.PrefetchScalarGridSpec(
            num_scalar_prefetch=0,
            grid=(n_cores, steps_per_core),
            in_specs=[
                pl.BlockSpec((block_rows, LANES), in_map),
                pl.BlockSpec((block_rows, LANES), in_map),
            ],
            out_specs=pl.BlockSpec((8, LANES), lambda c, s: (c, 0)),
        ),
        compiler_params=pltpu.CompilerParams(
            dimension_semantics=("parallel", "arbitrary"),
        ),
    )(p2, t2)

    # Tiny final cross-lane reduce (<= 2 KiB) + sqrt outside the kernel.
    return jnp.sqrt(jnp.sum(partials) + tail_sq).astype(pred.dtype)


if __name__ == "__main__":
    key = jax.random.PRNGKey(0)
    k1, k2, k3, k4 = jax.random.split(key, 4)

    # Primary small-shape test matching the module's expected use.
    pred = jax.random.normal(k1, (2, 4, 16, 16), dtype=jnp.float32)
    target = jax.random.normal(k2, (2, 4, 16, 16), dtype=jnp.float32)
    loss = frobenius_norm_loss(pred, target)
    jax.block_until_ready(loss)
    ref = jnp.sqrt(jnp.sum((pred - target) ** 2))
    assert jnp.allclose(loss, ref, rtol=1e-5, atol=1e-5), (loss, ref)

    # Ragged test: n % 128 != 0 exercises the masked last block + tiny jnp tail.
    pred2 = jax.random.normal(k3, (2, 3, 7, 31), dtype=jnp.float32)
    target2 = jax.random.normal(k4, (2, 3, 7, 31), dtype=jnp.float32)
    loss2 = frobenius_norm_loss(pred2, target2)
    jax.block_until_ready(loss2)
    ref2 = jnp.sqrt(jnp.sum((pred2 - target2) ** 2))
    assert jnp.allclose(loss2, ref2, rtol=1e-5, atol=1e-5), (loss2, ref2)

    # Multi-step accumulation path: force a small block so the grid runs >1 step.
    loss3 = frobenius_norm_loss(pred, target, block_rows_max=8)
    jax.block_until_ready(loss3)
    assert jnp.allclose(loss3, ref, rtol=1e-5, atol=1e-5), (loss3, ref)

    print("KERNEL_OK")
</pallas_src>

<mosaic_0001>
module attributes {stable_mosaic.version = 11 : i64} {
  func.func @kernel(%arg0: i32, %arg1: i32, %arg2: memref<16x128xf32, #tpu.memory_space<vmem>>, %arg3: memref<16x128xf32, #tpu.memory_space<vmem>>, %arg4: memref<8x128xf32, #tpu.memory_space<vmem>>) attributes {dimension_semantics = [#tpu.dimension_semantics<parallel>, #tpu.dimension_semantics<arbitrary>], iteration_bounds = array<i64: 1, 1>, scalar_prefetch = 0 : i64, scratch_operands = 0 : i64, tpu.core_type = #tpu.core_type<tc>, window_params = [{transform_indices = @transform_0, window_bounds = array<i64: 16, 128>}, {transform_indices = @transform_1, window_bounds = array<i64: 16, 128>}, {transform_indices = @transform_2, window_bounds = array<i64: 8, 128>}]} {
    %c0_i32 = arith.constant 0 : i32
    %0 = arith.cmpi eq, %arg1, %c0_i32 : i32
    %1 = arith.extui %0 : i1 to i32
    %c0_i32_0 = arith.constant 0 : i32
    %2 = arith.cmpi ne, %1, %c0_i32_0 : i32
    scf.if %2 {
      %cst_8 = arith.constant 0.000000e+00 : f32
      %12 = vector.broadcast %cst_8 : f32 to vector<8x128xf32>
      %c0_9 = arith.constant 0 : index
      %c0_10 = arith.constant 0 : index
      %13 = vector.load %arg4[%c0_9, %c0_10] : memref<8x128xf32, #tpu.memory_space<vmem>>, vector<8x128xf32>
      tpu.vector_store %arg4[%c0_9, %c0_10], %12 {strides = array<i32>} : memref<8x128xf32, #tpu.memory_space<vmem>>, vector<8x128xf32>,
    } else {
    }
    %c0 = arith.constant 0 : index
    %c0_1 = arith.constant 0 : index
    %3 = vector.load %arg2[%c0, %c0_1] : memref<16x128xf32, #tpu.memory_space<vmem>>, vector<16x128xf32>
    %c0_2 = arith.constant 0 : index
    %c0_3 = arith.constant 0 : index
    %4 = vector.load %arg3[%c0_2, %c0_3] : memref<16x128xf32, #tpu.memory_space<vmem>>, vector<16x128xf32>
    %5 = arith.subf %3, %4 : vector<16x128xf32>
    %6 = arith.mulf %5, %5 : vector<16x128xf32>
    %c0_4 = arith.constant 0 : index
    %c0_5 = arith.constant 0 : index
    %7 = vector.load %arg4[%c0_4, %c0_5] : memref<8x128xf32, #tpu.memory_space<vmem>>, vector<8x128xf32>
    %8 = vector.shape_cast %6 : vector<16x128xf32> to vector<2x8x128xf32>
    %cst = arith.constant dense<0.000000e+00> : vector<8x128xf32>
    %9 = vector.multi_reduction <add>, %8, %cst [0] : vector<2x8x128xf32> to vector<8x128xf32>
    %10 = arith.addf %7, %9 : vector<8x128xf32>
    %c0_6 = arith.constant 0 : index
    %c0_7 = arith.constant 0 : index
    %11 = vector.load %arg4[%c0_6, %c0_7] : memref<8x128xf32, #tpu.memory_space<vmem>>, vector<8x128xf32>
    tpu.vector_store %arg4[%c0_6, %c0_7], %10 {strides = array<i32>} : memref<8x128xf32, #tpu.memory_space<vmem>>, vector<8x128xf32>,
    return
  }
  func.func @transform_0(%arg0: i32, %arg1: i32) -> (i32, i32) {
    %c1_i32 = arith.constant 1 : i32
    %0 = arith.muli %arg0, %c1_i32 : i32
    %1 = arith.addi %0, %arg1 : i32
    %c0_i32 = arith.constant 0 : i32
    %c0_i32_0 = arith.constant 0 : i32
    return %1, %c0_i32 : i32, i32
  }
  func.func @transform_1(%arg0: i32, %arg1: i32) -> (i32, i32) {
    %c1_i32 = arith.constant 1 : i32
    %0 = arith.muli %arg0, %c1_i32 : i32
    %1 = arith.addi %0, %arg1 : i32
    %c0_i32 = arith.constant 0 : i32
    %c0_i32_0 = arith.constant 0 : i32
    return %1, %c0_i32 : i32, i32
  }
  func.func @transform_2(%arg0: i32, %arg1: i32) -> (i32, i32) {
    %c0_i32 = arith.constant 0 : i32
    %c0_i32_0 = arith.constant 0 : i32
    return %arg0, %c0_i32 : i32, i32
  }
}

</mosaic_0001>

<bundles_post_ra>
// kernel: frobenius_norm_loss.1
= control target key start
LH: loop header
LB: loop body
LE: loop exit
PB: predicated region body
PF: predicated region fallthrough
CT: control target
= control target key end

     0   :  { %s119_s0 = inlined_call_operand.vmem [shape: f32[16,128], index: 0, kind: input, shape index: {}]   ;;  %s120_s1 = inlined_call_operand.vmem [shape: f32[16,128], index: 1, kind: input, shape index: {}]   ;;  %s121_s2 = inlined_call_operand.vmem [shape: f32[8,128], index: 2, kind: output, shape index: {}]  }
   0x1   :  { %v60_v0 = vld [vmem:[%s119_s0] sm:$0xff]  ;;  %v61_v1 = vld [vmem:[%s119_s0 + $0x8] sm:$0xff] }
   0x2   :  { %v62_v2 = vld [vmem:[%s120_s1] sm:$0xff]  ;;  %v63_v3 = vld [vmem:[%s120_s1 + $0x8] sm:$0xff] }
   0x3   :  { %v64_v4 = vsub.f32 %v60_v0, %v62_v2  ;;  %v65_v5 = vsub.f32 %v61_v1, %v63_v3 }
   0x5   :  { %v66_v6 = vmul.f32 %v64_v4, %v64_v4  ;;  %v67_v7 = vmul.f32 %v65_v5, %v65_v5 }
   0x7   :  { %v69_v8 = vadd.f32 %v67_v7, %v66_v6 }
   0x9   :  { %71 = vst [vmem:[%s121_s2] sm:$0xff] %v69_v8 }

</bundles_post_ra>
